<compile_context>
chip_gen: v7x
topology: tpu7x:2x2x1
jax: 0.10.0
libtpu: 0.0.40
codegen_flags: <defaults>
</compile_context>

<pallas_src>
import functools

import jax
import jax.numpy as jnp
from jax.experimental import pallas as pl
from jax.experimental.pallas import tpu as pltpu


def _round_up(n, m):
    return (n + m - 1) // m * m


def _tile(batch, tb):
    """Pick the batch tile and padded batch (all Python ints at trace time)."""
    tb = min(tb, _round_up(batch, 128))
    b_pad = _round_up(batch, tb)
    # v7x dual-TC: keep >= 4 grid steps when the batch is large enough so the
    # "parallel" batch axis shards across both TensorCores (harmless on
    # single-TC v5e / v6e - just a few more, still well-amortized, steps).
    if b_pad // tb < 4 and b_pad >= 4 * 128:
        tb = _round_up(pl.cdiv(b_pad, 4), 128)
        b_pad = _round_up(batch, tb)
    return tb, b_pad


def dnn_kernel(x_ref, w1_ref, b1_ref, w2_ref, b2_ref,
               w3_ref, b3_ref, w4t_ref, b4_ref, o_ref):
    """Fused MLP on a transposed (features, TB) activation layout.

    x_ref  : (5, TB)  compute dtype (bf16 or f32)
    w1..w3 : (out,in) compute dtype    b1..b3 : (out,1) f32
    w4t    : (32, 1)  f32 (layer-4 weight as a column, for the VPU/XLU path)
    b4     : (1, 1)   f32
    o_ref  : (1, TB)  f32
    """
    compute_dtype = x_ref.dtype
    xt = x_ref[...]                                                  # (5, TB)

    h = jnp.dot(w1_ref[...], xt, preferred_element_type=jnp.float32)
    h = jnp.maximum(h + b1_ref[...], 0.0).astype(compute_dtype)     # (32, TB)

    h = jnp.dot(w2_ref[...], h, preferred_element_type=jnp.float32)
    h = jnp.maximum(h + b2_ref[...], 0.0).astype(compute_dtype)     # (32, TB)

    h3 = jnp.dot(w3_ref[...], h, preferred_element_type=jnp.float32)
    h3 = jnp.maximum(h3 + b3_ref[...], 0.0)                         # f32 (32, TB)

    # Layer 4 (32 -> 1) off the MXU: per-sublane scale (VPU) + sublane-axis
    # reduction (XLU). Both units have slack while the MXU push slot is busy.
    out = jnp.sum(h3 * w4t_ref[...], axis=0, keepdims=True)         # (1, TB)
    o_ref[...] = (out + b4_ref[...]).astype(o_ref.dtype)


def _dnn_call(xt_pad, params, compute_dtype, tb, b_pad):
    """Core pallas_call on a feature-major, padded (5, b_pad) input."""
    w = [params[f"w{i}"].astype(compute_dtype) for i in range(1, 4)]
    b = [params[f"b{i}"] for i in range(1, 5)]                       # f32
    w4t = params["w4"].T                                             # (32, 1) f32

    grid = (b_pad // tb,)

    def resident(a):  # whole array, VMEM-resident across every grid step
        return pl.BlockSpec(a.shape, lambda i: (0, 0))

    return pl.pallas_call(
        dnn_kernel,
        out_shape=jax.ShapeDtypeStruct((1, b_pad), jnp.float32),
        grid=grid,
        in_specs=[
            pl.BlockSpec((5, tb), lambda i: (0, i)),                 # streamed x
            resident(w[0]), resident(b[0]),
            resident(w[1]), resident(b[1]),
            resident(w[2]), resident(b[2]),
            resident(w4t), resident(b[3]),
        ],
        out_specs=pl.BlockSpec((1, tb), lambda i: (0, i)),           # lane-dense
        compiler_params=pltpu.CompilerParams(
            dimension_semantics=("parallel",),                       # v7x dual-TC
            vmem_limit_bytes=32 * 1024 * 1024),
    )(xt_pad, w[0], b[0], w[1], b[1], w[2], b[2], w4t, b[3])


@functools.partial(jax.jit, static_argnames=("compute_dtype", "tb"))
def dnn_forward(x, params, *, compute_dtype=jnp.bfloat16, tb=8192):
    """x: (B, 5) float32 (torch layout). Returns (B, 1) float32."""
    B, F = x.shape
    assert F == 5
    tb, b_pad = _tile(B, tb)

    # Layout plumbing: one pad + transpose + cast pass over x. If the caller
    # can cache x upstream in feature-major (5, B) compute dtype, use
    # dnn_forward_feature_major instead and skip this extra HBM pass.
    x_pad = jnp.pad(x, ((0, b_pad - B), (0, 0)))
    xt = x_pad.T.astype(compute_dtype)                               # (5, b_pad)

    out_t = _dnn_call(xt, params, compute_dtype, tb, b_pad)
    return out_t[:, :B].T                                            # (B, 1)


@functools.partial(jax.jit, static_argnames=("tb",))
def dnn_forward_feature_major(xt, params, *, tb=8192):
    """xt: (5, B) already feature-major in the compute dtype. Returns (1, B) f32."""
    F, B = xt.shape
    assert F == 5
    compute_dtype = xt.dtype
    tb, b_pad = _tile(B, tb)
    xt_pad = jnp.pad(xt, ((0, 0), (0, b_pad - B)))
    out_t = _dnn_call(xt_pad, params, compute_dtype, tb, b_pad)
    return out_t[:, :B]                                              # (1, B)


def init_params(key):
    """torch.nn.Linear-style U(-1/sqrt(fan_in), +) init; W stored (out, in)."""
    dims = [(5, 32), (32, 32), (32, 32), (32, 1)]
    params = {}
    for i, (fan_in, fan_out) in enumerate(dims, start=1):
        key, kw, kb = jax.random.split(key, 3)
        bound = 1.0 / jnp.sqrt(jnp.float32(fan_in))
        params[f"w{i}"] = jax.random.uniform(
            kw, (fan_out, fan_in), jnp.float32, -bound, bound)
        params[f"b{i}"] = jax.random.uniform(
            kb, (fan_out, 1), jnp.float32, -bound, bound)
    return params


def dnn_reference(x, params, compute_dtype):
    """Plain-JAX forward mirroring the kernel's dtype policy:
    layers 1-3 matmul in compute_dtype with f32 accumulation/bias/ReLU,
    layer 4 entirely in f32 (matches the kernel's VPU/XLU output path)."""
    h_c = x.astype(compute_dtype)
    h_f32 = None
    for i in range(1, 4):
        w = params[f"w{i}"].astype(compute_dtype)
        h_f32 = (jnp.dot(h_c, w.T, preferred_element_type=jnp.float32)
                 + params[f"b{i}"].T)
        h_f32 = jnp.maximum(h_f32, 0.0)
        h_c = h_f32.astype(compute_dtype)
    return jnp.dot(h_f32, params["w4"].T) + params["b4"].T


if __name__ == "__main__":
    key = jax.random.PRNGKey(0)
    key, kx = jax.random.split(key)
    B = 8
    x = jax.random.normal(kx, (B, 5), jnp.float32)
    params = init_params(key)

    # f32 path (tight check, matches torch-f32 math).
    out_f32 = jax.block_until_ready(
        dnn_forward(x, params, compute_dtype=jnp.float32))
    ref_f32 = dnn_reference(x, params, jnp.float32)
    assert out_f32.shape == (B, 1)
    assert jnp.allclose(out_f32, ref_f32, atol=1e-4, rtol=1e-4)

    # Default bf16 streaming path.
    out_bf16 = jax.block_until_ready(dnn_forward(x, params))
    ref_bf16 = dnn_reference(x, params, jnp.bfloat16)
    assert out_bf16.shape == (B, 1)
    assert jnp.allclose(out_bf16, ref_bf16, atol=5e-3, rtol=5e-3)

    # Larger batch exercising the multi-step grid (>=4 steps) + padding path.
    key, kx2 = jax.random.split(key)
    B2 = 3000
    x2 = jax.random.normal(kx2, (B2, 5), jnp.float32)
    out2 = jax.block_until_ready(dnn_forward(x2, params))
    ref2 = dnn_reference(x2, params, jnp.bfloat16)
    assert out2.shape == (B2, 1)
    assert jnp.allclose(out2, ref2, atol=5e-3, rtol=5e-3)

    # Feature-major entry point (skips the wrapper relayout pass).
    xt2 = x2.T.astype(jnp.bfloat16)
    out_fm = jax.block_until_ready(dnn_forward_feature_major(xt2, params))
    assert out_fm.shape == (1, B2)
    assert jnp.allclose(out_fm.T, out2, atol=1e-5, rtol=1e-5)

    print("KERNEL_OK")
</pallas_src>

<mosaic_0001>
module attributes {stable_mosaic.version = 11 : i64} {
  func.func @dnn_kernel(%arg0: i32, %arg1: memref<5x128xf32, #tpu.memory_space<vmem>>, %arg2: memref<32x5xf32, #tpu.memory_space<vmem>>, %arg3: memref<32x1xf32, #tpu.memory_space<vmem>>, %arg4: memref<32x32xf32, #tpu.memory_space<vmem>>, %arg5: memref<32x1xf32, #tpu.memory_space<vmem>>, %arg6: memref<32x32xf32, #tpu.memory_space<vmem>>, %arg7: memref<32x1xf32, #tpu.memory_space<vmem>>, %arg8: memref<32x1xf32, #tpu.memory_space<vmem>>, %arg9: memref<1x1xf32, #tpu.memory_space<vmem>>, %arg10: memref<1x128xf32, #tpu.memory_space<vmem>>) attributes {dimension_semantics = [#tpu.dimension_semantics<parallel>], iteration_bounds = array<i64: 1>, scalar_prefetch = 0 : i64, scratch_operands = 0 : i64, tpu.core_type = #tpu.core_type<tc>, window_params = [{transform_indices = @transform_0, window_bounds = array<i64: 5, 128>}, {pipeline_mode = #tpu.pipeline_mode<synchronous>, transform_indices = @transform_1, window_bounds = array<i64: 32, 5>}, {pipeline_mode = #tpu.pipeline_mode<synchronous>, transform_indices = @transform_2, window_bounds = array<i64: 32, 1>}, {pipeline_mode = #tpu.pipeline_mode<synchronous>, transform_indices = @transform_3, window_bounds = array<i64: 32, 32>}, {pipeline_mode = #tpu.pipeline_mode<synchronous>, transform_indices = @transform_4, window_bounds = array<i64: 32, 1>}, {pipeline_mode = #tpu.pipeline_mode<synchronous>, transform_indices = @transform_5, window_bounds = array<i64: 32, 32>}, {pipeline_mode = #tpu.pipeline_mode<synchronous>, transform_indices = @transform_6, window_bounds = array<i64: 32, 1>}, {pipeline_mode = #tpu.pipeline_mode<synchronous>, transform_indices = @transform_7, window_bounds = array<i64: 32, 1>}, {pipeline_mode = #tpu.pipeline_mode<synchronous>, transform_indices = @transform_8, window_bounds = array<i64: 1, 1>}, {transform_indices = @transform_9, window_bounds = array<i64: 1, 128>}]} {
    %c0 = arith.constant 0 : index
    %c0_0 = arith.constant 0 : index
    %0 = vector.load %arg1[%c0, %c0_0] : memref<5x128xf32, #tpu.memory_space<vmem>>, vector<5x128xf32>
    %c0_1 = arith.constant 0 : index
    %c0_2 = arith.constant 0 : index
    %1 = vector.load %arg2[%c0_1, %c0_2] : memref<32x5xf32, #tpu.memory_space<vmem>>, vector<32x5xf32>
    %cst = arith.constant dense<0.000000e+00> : vector<32x128xf32>
    %2 = tpu.matmul %1, %0, %cst {dimension_numbers = #tpu.dot_dimension_numbers<[1], [0], [0], [1], [0, 0, 1, 1], [], []>} : vector<32x5xf32>, vector<5x128xf32>, vector<32x128xf32> -> vector<32x128xf32>
    %c0_3 = arith.constant 0 : index
    %c0_4 = arith.constant 0 : index
    %3 = vector.load %arg3[%c0_3, %c0_4] : memref<32x1xf32, #tpu.memory_space<vmem>>, vector<32x1xf32>
    %4 = vector.broadcast %3 : vector<32x1xf32> to vector<32x128xf32>
    %5 = arith.addf %2, %4 : vector<32x128xf32>
    %cst_5 = arith.constant 0.000000e+00 : f32
    %6 = vector.broadcast %cst_5 : f32 to vector<32x128xf32>
    %7 = arith.maximumf %5, %6 : vector<32x128xf32>
    %c0_6 = arith.constant 0 : index
    %c0_7 = arith.constant 0 : index
    %8 = vector.load %arg4[%c0_6, %c0_7] : memref<32x32xf32, #tpu.memory_space<vmem>>, vector<32x32xf32>
    %cst_8 = arith.constant dense<0.000000e+00> : vector<32x128xf32>
    %9 = tpu.matmul %8, %7, %cst_8 {dimension_numbers = #tpu.dot_dimension_numbers<[1], [0], [0], [1], [0, 0, 1, 1], [], []>} : vector<32x32xf32>, vector<32x128xf32>, vector<32x128xf32> -> vector<32x128xf32>
    %c0_9 = arith.constant 0 : index
    %c0_10 = arith.constant 0 : index
    %10 = vector.load %arg5[%c0_9, %c0_10] : memref<32x1xf32, #tpu.memory_space<vmem>>, vector<32x1xf32>
    %11 = vector.broadcast %10 : vector<32x1xf32> to vector<32x128xf32>
    %12 = arith.addf %9, %11 : vector<32x128xf32>
    %cst_11 = arith.constant 0.000000e+00 : f32
    %13 = vector.broadcast %cst_11 : f32 to vector<32x128xf32>
    %14 = arith.maximumf %12, %13 : vector<32x128xf32>
    %c0_12 = arith.constant 0 : index
    %c0_13 = arith.constant 0 : index
    %15 = vector.load %arg6[%c0_12, %c0_13] : memref<32x32xf32, #tpu.memory_space<vmem>>, vector<32x32xf32>
    %cst_14 = arith.constant dense<0.000000e+00> : vector<32x128xf32>
    %16 = tpu.matmul %15, %14, %cst_14 {dimension_numbers = #tpu.dot_dimension_numbers<[1], [0], [0], [1], [0, 0, 1, 1], [], []>} : vector<32x32xf32>, vector<32x128xf32>, vector<32x128xf32> -> vector<32x128xf32>
    %c0_15 = arith.constant 0 : index
    %c0_16 = arith.constant 0 : index
    %17 = vector.load %arg7[%c0_15, %c0_16] : memref<32x1xf32, #tpu.memory_space<vmem>>, vector<32x1xf32>
    %18 = vector.broadcast %17 : vector<32x1xf32> to vector<32x128xf32>
    %19 = arith.addf %16, %18 : vector<32x128xf32>
    %cst_17 = arith.constant 0.000000e+00 : f32
    %20 = vector.broadcast %cst_17 : f32 to vector<32x128xf32>
    %21 = arith.maximumf %19, %20 : vector<32x128xf32>
    %c0_18 = arith.constant 0 : index
    %c0_19 = arith.constant 0 : index
    %22 = vector.load %arg8[%c0_18, %c0_19] : memref<32x1xf32, #tpu.memory_space<vmem>>, vector<32x1xf32>
    %23 = vector.broadcast %22 : vector<32x1xf32> to vector<32x128xf32>
    %24 = arith.mulf %21, %23 : vector<32x128xf32>
    %cst_20 = arith.constant dense<0.000000e+00> : vector<128xf32>
    %25 = vector.multi_reduction <add>, %24, %cst_20 [0] : vector<32x128xf32> to vector<128xf32>
    %26 = vector.shape_cast %25 : vector<128xf32> to vector<1x128xf32>
    %c0_21 = arith.constant 0 : index
    %c0_22 = arith.constant 0 : index
    %27 = vector.load %arg9[%c0_21, %c0_22] : memref<1x1xf32, #tpu.memory_space<vmem>>, vector<1x1xf32>
    %28 = vector.broadcast %27 : vector<1x1xf32> to vector<1x128xf32>
    %29 = arith.addf %26, %28 : vector<1x128xf32>
    %c0_23 = arith.constant 0 : index
    %c0_24 = arith.constant 0 : index
    %30 = vector.load %arg10[%c0_23, %c0_24] : memref<1x128xf32, #tpu.memory_space<vmem>>, vector<1x128xf32>
    tpu.vector_store %arg10[%c0_23, %c0_24], %29 {strides = array<i32>} : memref<1x128xf32, #tpu.memory_space<vmem>>, vector<1x128xf32>,
    return
  }
  func.func @transform_0(%arg0: i32) -> (i32, i32) {
    %c0_i32 = arith.constant 0 : i32
    %c0_i32_0 = arith.constant 0 : i32
    return %c0_i32, %arg0 : i32, i32
  }
  func.func @transform_1(%arg0: i32) -> (i32, i32) {
    %c0_i32 = arith.constant 0 : i32
    %c0_i32_0 = arith.constant 0 : i32
    %c0_i32_1 = arith.constant 0 : i32
    return %c0_i32, %c0_i32_0 : i32, i32
  }
  func.func @transform_2(%arg0: i32) -> (i32, i32) {
    %c0_i32 = arith.constant 0 : i32
    %c0_i32_0 = arith.constant 0 : i32
    %c0_i32_1 = arith.constant 0 : i32
    return %c0_i32, %c0_i32_0 : i32, i32
  }
  func.func @transform_3(%arg0: i32) -> (i32, i32) {
    %c0_i32 = arith.constant 0 : i32
    %c0_i32_0 = arith.constant 0 : i32
    %c0_i32_1 = arith.constant 0 : i32
    return %c0_i32, %c0_i32_0 : i32, i32
  }
  func.func @transform_4(%arg0: i32) -> (i32, i32) {
    %c0_i32 = arith.constant 0 : i32
    %c0_i32_0 = arith.constant 0 : i32
    %c0_i32_1 = arith.constant 0 : i32
    return %c0_i32, %c0_i32_0 : i32, i32
  }
  func.func @transform_5(%arg0: i32) -> (i32, i32) {
    %c0_i32 = arith.constant 0 : i32
    %c0_i32_0 = arith.constant 0 : i32
    %c0_i32_1 = arith.constant 0 : i32
    return %c0_i32, %c0_i32_0 : i32, i32
  }
  func.func @transform_6(%arg0: i32) -> (i32, i32) {
    %c0_i32 = arith.constant 0 : i32
    %c0_i32_0 = arith.constant 0 : i32
    %c0_i32_1 = arith.constant 0 : i32
    return %c0_i32, %c0_i32_0 : i32, i32
  }
  func.func @transform_7(%arg0: i32) -> (i32, i32) {
    %c0_i32 = arith.constant 0 : i32
    %c0_i32_0 = arith.constant 0 : i32
    %c0_i32_1 = arith.constant 0 : i32
    return %c0_i32, %c0_i32_0 : i32, i32
  }
  func.func @transform_8(%arg0: i32) -> (i32, i32) {
    %c0_i32 = arith.constant 0 : i32
    %c0_i32_0 = arith.constant 0 : i32
    %c0_i32_1 = arith.constant 0 : i32
    return %c0_i32, %c0_i32_0 : i32, i32
  }
  func.func @transform_9(%arg0: i32) -> (i32, i32) {
    %c0_i32 = arith.constant 0 : i32
    %c0_i32_0 = arith.constant 0 : i32
    return %c0_i32, %arg0 : i32, i32
  }
}

</mosaic_0001>

<bundles_post_ra>
// kernel: dnn_forward.1
= control target key start
LH: loop header
LB: loop body
LE: loop exit
PB: predicated region body
PF: predicated region fallthrough
CT: control target
= control target key end

     0   :  { %vm76_vm0 = vcmask 1044480   ;;  %vm63_vm1 = vcmask 39936   ;;  %v570_v3 = vmov 0   ;;  %vm197_vm2 = vcmask 261120   ;;  %s728_s0 = inlined_call_operand.vmem [shape: f32[5,128], index: 0, kind: input, shape index: {}]   ;;  %s729_s1 = inlined_call_operand.vmem [shape: f32[32,5], index: 1, kind: input, shape index: {}]   ;;  %s730_s2 = inlined_call_operand.vmem [shape: f32[32,1], index: 2, kind: input, shape index: {}]   ;;  %s731_s8 = inlined_call_operand.<no memory space> [shape: f32[1,1], index: 8, kind: input, shape index: {}]   ;;  %s732_s4 = inlined_call_operand.vmem [shape: f32[32,1], index: 4, kind: input, shape index: {}]   ;;  %s733_s6 = inlined_call_operand.vmem [shape: f32[32,1], index: 6, kind: input, shape index: {}]   ;;  %s734_s7 = inlined_call_operand.vmem [shape: f32[32,1], index: 7, kind: input, shape index: {}]   ;;  %s735_s3 = inlined_call_operand.vmem [shape: f32[32,32], index: 3, kind: input, shape index: {}]   ;;  %s736_s5 = inlined_call_operand.vmem [shape: f32[32,32], index: 5, kind: input, shape index: {}]   ;;  %s737_s9 = inlined_call_operand.vmem [shape: f32[1,128], index: 9, kind: output, shape index: {}]  }
   0x1   :  { %v34_v0 = vld [vmem:[%s728_s0] sm:$0x1f]  ;;  %v36_v2 = vld [vmem:[%s729_s1 + $0x8] sm:$0xff]  ;;  %568 = vset.pattern.permute.xlu0 %v570_v3  ;;  %569 = vset.pattern.permute.xlu1 %v570_v3  ;;  %v14_v4 = vstv %s731_s8  ;;  %v37_v5 = vld [vmem:[%s729_s1 + $0x10] sm:$0xff] }
   0x2   :  { %v35_v1 = vld [vmem:[%s729_s1] sm:$0xff]  ;;  %515 = vmatprep.subr.msk.mxu0 %vm76_vm0, %v34_v0  ;;  %15 = vst [vmem:[#allocation2] sm:$0x1] %v14_v4  ;;  %v41_v7 = vld [vmem:[%s730_s2 + $0x10] sm:$0xff]  ;;  %v40_v8 = vld [vmem:[%s730_s2 + $0x8] sm:$0xff] }
   0x3   :  { %517 = vmatprep.mubr.msk.f32.mxu0 %vm63_vm1, %v35_v1  ;;  %v39_v6 = vld [vmem:[%s730_s2] sm:$0xff]  ;;  %516 = vmatpush3.msk.msra.mxu0 %vm76_vm0, %v34_v0  ;;  %v38_v9 = vld [vmem:[%s729_s1 + $0x18] sm:$0xff]  ;;  %v174_v12 = vld [vmem:[%s732_s4 + $0x8] sm:$0xff] }
   0x4   :  { %45 = vperm.xlu0 %568, %v39_v6   ;;  %518 = vmatmul.mubr.msk.f32.vlgmr.msra.gmra.mrb[0].mxu0 %vm63_vm1, %v36_v2  ;;  %v42_v10 = vld [vmem:[%s730_s2 + $0x18] sm:$0xff]  ;;  %v173_v11 = vld [vmem:[%s732_s4] sm:$0xff]  ;;  %v175_v13 = vld [vmem:[%s732_s4 + $0x10] sm:$0xff] }
   0x5   :  { %55 = vperm.xlu1 %569, %v41_v7   ;;  %520 = vmatprep.mubr.msk.f32.mxu0 %vm63_vm1, %v37_v5  ;;  %v176_v14 = vld [vmem:[%s732_s4 + $0x18] sm:$0xff]  ;;  %v303_v15 = vld [vmem:[%s733_s6] sm:$0xff]  ;;  %v304_v16 = vld [vmem:[%s733_s6 + $0x8] sm:$0xff] }
   0x6   :  { %v305_v17 = vld [vmem:[%s733_s6 + $0x10] sm:$0xff]  ;;  %v306_v18 = vld [vmem:[%s733_s6 + $0x18] sm:$0xff]  ;;  %v428_v19 = vld [vmem:[%s734_s7] sm:$0xff] }
   0x7   :  { %v429_v20 = vld [vmem:[%s734_s7 + $0x8] sm:$0xff]  ;;  %v430_v21 = vld [vmem:[%s734_s7 + $0x10] sm:$0xff]  ;;  %v431_v22 = vld [vmem:[%s734_s7 + $0x18] sm:$0xff] }
   0x8   :  { %50 = vperm.xlu0 %568, %v40_v8   ;;  %521 = vmatmul.mubr.msk.f32.gmra.mrb[2].mxu0 %vm63_vm1, %v38_v9  ;;  %v169_v24 = vld [vmem:[%s735_s3] sm:$0xff]  ;;  %v170_v43 = vld [vmem:[%s735_s3 + $0x8] sm:$0xff]  ;;  %v171_v44 = vld [vmem:[%s735_s3 + $0x10] sm:$0xff] }
   0x9   :  { %60 = vperm.xlu1 %569, %v42_v10   ;;  %v465_v23 = vld [vmem:[#allocation2] sm:$0x1]  ;;  %531 = vmatprep.mubr.msk.f32.mxu1 %vm197_vm2, %v169_v24  ;;  %v172_v45 = vld [vmem:[%s735_s3 + $0x18] sm:$0xff]  ;;  %v300_v1 = vld [vmem:[%s736_s5 + $0x8] sm:$0xff] }
   0xa   :  { %v299_v46 = vld [vmem:[%s736_s5] sm:$0xff]  ;;  %v301_v2 = vld [vmem:[%s736_s5 + $0x10] sm:$0xff]  ;;  %v302_v3 = vld [vmem:[%s736_s5 + $0x18] sm:$0xff] }
   0xb   :  { %545 = vmatprep.mubr.msk.f32.mxu0 %vm197_vm2, %v299_v46 }
   0xc   :  { %179 = vperm.xlu0 %568, %v173_v11  }
   0xd   :  { %184 = vperm.xlu1 %569, %v174_v12  }
  0x10   :  { %189 = vperm.xlu0 %568, %v175_v13  }
  0x11   :  { %194 = vperm.xlu1 %569, %v176_v14  }
  0x14   :  { %309 = vperm.xlu0 %568, %v303_v15  }
  0x15   :  { %314 = vperm.xlu1 %569, %v304_v16  }
  0x18   :  { %319 = vperm.xlu0 %568, %v305_v17  }
  0x19   :  { %324 = vperm.xlu1 %569, %v306_v18  }
  0x1c   :  { %434 = vperm.xlu0 %568, %v428_v19  }
  0x1d   :  { %439 = vperm.xlu1 %569, %v429_v20  }
  0x20   :  { %444 = vperm.xlu0 %568, %v430_v21  }
  0x21   :  { %449 = vperm.xlu1 %569, %v431_v22  }
  0x24   :  { %468 = vperm.xlu0 %568, %v465_v23  }
  0x83   :  { %v46_v25 = vpop.permute.xlu0 %45 }
  0x84   :  { %v56_v26 = vpop.permute.xlu1 %55 }
  0x87   :  { %v51_v27 = vpop.permute.xlu0 %50 }
  0x88   :  { %v61_v33 = vpop.permute.xlu1 %60 }
  0x8b   :  { %v180_v48 = vpop.permute.xlu0 %179 }
  0x8c   :  { %v185_v47 = vpop.permute.xlu1 %184 }
  0x8f   :  { %v190_v57 = vpop.permute.xlu0 %189 }
  0x90   :  { %v195_v54 = vpop.permute.xlu1 %194 }
  0x93   :  { %v310_v4 = vpop.permute.xlu0 %309 }
  0x94   :  { %v315_v5 = vpop.permute.xlu1 %314 }
  0x97   :  { %v320_v6 = vpop.permute.xlu0 %319 }
  0x98   :  { %v325_v7 = vpop.permute.xlu1 %324 }
  0x9b   :  { %v435_v12 = vpop.permute.xlu0 %434 }
  0x9c   :  { %v440_v14 = vpop.permute.xlu1 %439 }
  0xd7   :  { %v519_v28 = vpop.f32.mrb[0].mxu0 }
  0xd8   :  { %v152_v29 = vadd.f32 %v519_v28, %v51_v27  ;;  %v146_v30 = vpop.f32.mrb[1].mxu0  ;;  %v450_v27 = vpop.permute.xlu1 %449 }
  0xd9   :  { %v147_v31 = vadd.f32 %v146_v30, %v46_v25  ;;  %v445_v25 = vpop.permute.xlu0 %444  ;;  %v471_v30 = vlaneseq }
  0xda   :  { %v166_v32 = vmax.f32 %v152_v29, 0.0 }
  0xdb   :  { %v165_v34 = vmax.f32 %v147_v31, 0.0  ;;  %v522_v35 = vpop.f32.mrb[2].mxu0 }
  0xdc   :  { %v162_v36 = vadd.f32 %v522_v35, %v61_v33  ;;  %v156_v37 = vpop.f32.mrb[3].mxu0  ;;  %v472_v33 = vshrl.u32 %v471_v30, 7 }
  0xdd   :  { %v157_v38 = vadd.f32 %v156_v37, %v56_v26  ;;  %v551_v39 = vpack.c.bf16 %v166_v32, %v165_v34 }
  0xde   :  { %v168_v40 = vmax.f32 %v162_v36, 0.0  ;;  %v473_v36 = vsub.s32 0, %v472_v33 }
  0xdf   :  { %v167_v41 = vmax.f32 %v157_v38, 0.0  ;;  %552 = vmatprep.subr.bf16.mxu1 %v551_v39  ;;  %v469_v38 = vpop.permute.xlu0 %468 }
  0xe0   :  { %554 = vmatpush3.bf16.msra.mxu1 %v551_v39 }
  0xe1   :  { %v555_v42 = vpack.c.bf16 %v168_v40, %v167_v41  ;;  %v474_v40 = vrot.slane %v469_v38, %v473_v36 }
  0xe3   :  { %556 = vmatprep.subr.bf16.mxu1 %v555_v42 }
  0xe4   :  { %558 = vmatpush3.bf16.msra.mxu1 %v555_v42 }
  0xe7   :  { %532 = vmatmul.mubr.msk.f32.vlgmr.msra.gmra.mrb[0].mxu1 %vm197_vm2, %v170_v43 }
  0xe8   :  { %534 = vmatprep.mubr.msk.f32.mxu1 %vm197_vm2, %v171_v44 }
  0xeb   :  { %535 = vmatmul.mubr.msk.f32.gmra.mrb[2].mxu1 %vm197_vm2, %v172_v45 }
 0x1ba   :  { %v533_v49 = vpop.f32.mrb[0].mxu1 }
 0x1bb   :  { %v282_v50 = vadd.f32 %v533_v49, %v185_v47  ;;  %v276_v51 = vpop.f32.mrb[1].mxu1 }
 0x1bc   :  { %v277_v52 = vadd.f32 %v276_v51, %v180_v48 }
 0x1bd   :  { %v296_v53 = vmax.f32 %v282_v50, 0.0 }
 0x1be   :  { %v295_v55 = vmax.f32 %v277_v52, 0.0  ;;  %v536_v56 = vpop.f32.mrb[2].mxu1 }
 0x1bf   :  { %v292_v58 = vadd.f32 %v536_v56, %v195_v54  ;;  %v286_v59 = vpop.f32.mrb[3].mxu1 }
 0x1c0   :  { %v559_v60 = vpack.c.bf16 %v296_v53, %v295_v55  ;;  %v287_v61 = vadd.f32 %v286_v59, %v190_v57 }
 0x1c1   :  { %v298_v62 = vmax.f32 %v292_v58, 0.0 }
 0x1c2   :  { %v297_v63 = vmax.f32 %v287_v61, 0.0  ;;  %560 = vmatprep.subr.bf16.mxu0 %v559_v60 }
 0x1c3   :  { %562 = vmatpush3.bf16.msra.mxu0 %v559_v60 }
 0x1c4   :  { %v563_v0 = vpack.c.bf16 %v298_v62, %v297_v63 }
 0x1c6   :  { %564 = vmatprep.subr.bf16.mxu0 %v563_v0 }
 0x1c7   :  { %566 = vmatpush3.bf16.msra.mxu0 %v563_v0 }
 0x1ca   :  { %546 = vmatmul.mubr.msk.f32.vlgmr.msra.gmra.mrb[4].mxu0 %vm197_vm2, %v300_v1 }
 0x1cb   :  { %548 = vmatprep.mubr.msk.f32.mxu0 %vm197_vm2, %v301_v2 }
 0x1ce   :  { %549 = vmatmul.mubr.msk.f32.gmra.mrb[6].mxu0 %vm197_vm2, %v302_v3 }
 0x29d   :  { %v547_v8 = vpop.f32.mrb[4].mxu0 }
 0x29e   :  { %v411_v9 = vadd.f32 %v547_v8, %v315_v5  ;;  %v405_v10 = vpop.f32.mrb[5].mxu0 }
 0x29f   :  { %v406_v11 = vadd.f32 %v405_v10, %v310_v4 }
 0x2a0   :  { %v425_v13 = vmax.f32 %v411_v9, 0.0 }
 0x2a1   :  { %v424_v15 = vmax.f32 %v406_v11, 0.0  ;;  %v550_v16 = vpop.f32.mrb[6].mxu0 }
 0x2a2   :  { %v453_v17 = vmul.f32 %v440_v14, %v425_v13  ;;  %v421_v18 = vadd.f32 %v550_v16, %v325_v7  ;;  %v415_v19 = vpop.f32.mrb[7].mxu0 }
 0x2a3   :  { %v452_v20 = vmul.f32 %v435_v12, %v424_v15  ;;  %v416_v21 = vadd.f32 %v415_v19, %v320_v6 }
 0x2a4   :  { %v427_v23 = vmax.f32 %v421_v18, 0.0 }
 0x2a5   :  { %v456_v22 = vadd.f32 %v453_v17, %v452_v20  ;;  %v426_v24 = vmax.f32 %v416_v21, 0.0 }
 0x2a6   :  { %v455_v28 = vmul.f32 %v450_v27, %v427_v23 }
 0x2a7   :  { %v454_v26 = vmul.f32 %v445_v25, %v426_v24 }
 0x2a9   :  { %v457_v29 = vadd.f32 %v456_v22, %v454_v26 }
 0x2ab   :  { %v458_v31 = vadd.f32 %v457_v29, %v455_v28 }
 0x2ad   :  { %v459_v32 = vrot.slane %v458_v31, 4 }
 0x2af   :  { %v460_v34 = vadd.f32 %v459_v32, %v458_v31 }
 0x2b1   :  { %v461_v35 = vrot.slane %v460_v34, 2 }
 0x2b3   :  { %v462_v37 = vadd.f32 %v461_v35, %v460_v34 }
 0x2b5   :  { %v463_v39 = vrot.slane %v462_v37, 1 }
 0x2b7   :  { %v464_v41 = vadd.f32 %v463_v39, %v462_v37 }
 0x2b9   :  { %v475_v42 = vadd.f32 %v474_v40, %v464_v41 }
 0x2bb   :  { %476 = vst [vmem:[%s737_s9] sm:$0x1] %v475_v42 }

</bundles_post_ra>
